<compile_context>
chip_gen: v7x
topology: tpu7x:2x2x1
jax: 0.10.0
libtpu: 0.0.40
codegen_flags: <defaults>
</compile_context>

<pallas_src>
import functools

import jax
import jax.numpy as jnp
import numpy as np
from jax.experimental import pallas as pl
from jax.experimental.pallas import tpu as pltpu


def _weighted_ce_kernel(yhat_ref, side_ref, out_ref, *, inv_n, bf16_logs):
    # Yhat streams through in its native dtype (bf16/f32); upcast in-register,
    # so the wrapper never materializes an f32 copy in HBM.
    yhat_native = yhat_ref[...]                       # (tb, N) native dtype
    yhat = yhat_native.astype(jnp.float32)            # (tb, N) f32

    side = side_ref[...]                              # (3, N) f32
    # Hoist the target broadcast once -- JAX does not CSE broadcast_in_dim.
    y_b = jnp.broadcast_to(side[0:1, :], yhat.shape)  # (tb, N)
    nwpos = side[1:2, :]                              # = -clamp(w_pos, min_val)
    nwneg = side[2:3, :]                              # = -clamp(w_neg, min_val)

    # Nested selects; weights arrive pre-negated (and pre-clamped).
    w = jnp.where(yhat > y_b, nwpos, jnp.where(yhat < y_b, nwneg, 0.0))

    if bf16_logs:
        # EUP bf16 path (v6e/v7x): ~2x transcendental throughput.
        # TODO(synk): enable per-generation after validating against tolerance.
        log_p = jnp.log(yhat_native.astype(jnp.bfloat16)).astype(jnp.float32)
        log_1mp = jnp.log((1.0 - yhat).astype(jnp.bfloat16)).astype(jnp.float32)
    else:
        log_p = jnp.log(yhat)
        log_1mp = jnp.log(1.0 - yhat)
    # PyTorch BCELoss clamps each log term at -100.
    log_p = jnp.maximum(log_p, -100.0)
    log_1mp = jnp.maximum(log_1mp, -100.0)

    # -BCE = y*(log_p - log_1mp) + log_1mp ;  (-BCE) * (-w) == error * weights
    neg_err = y_b * (log_p - log_1mp) + log_1mp

    # mean == sum * (1/N) with a compile-time constant (no per-step divide).
    # The (tb, 1) store is tiny next to the (tb, N) input stream and stays
    # hidden under the EUP / HBM critical path, so we keep the sublane output
    # layout (lane-dense relayout only pays off if xprof shows an exposed gap).
    out_ref[...] = jnp.sum(neg_err * w, axis=-1, keepdims=True) * inv_n


def _round_up8(x):
    return max(8, -(-int(x) // 8) * 8)


def _round_down8(x):
    return max(8, (int(x) // 8) * 8)


def _vmem_capacity_bytes():
    """Per-TensorCore VMEM capacity; conservative (v7x-sized) fallback."""
    try:
        info = pltpu.get_tpu_info()
        cap = getattr(info, "vmem_capacity_bytes", None)
        if cap:
            return int(cap)
    except Exception:
        pass
    return 64 << 20


def _choose_tile(B, N, itemsize, target_block_bytes, vmem_budget_bytes):
    """Pick rows-per-grid-step (tb).

    Targets ~target_block_bytes of Yhat per step (amortizes ~0.35us per-step
    pipeline overhead) while keeping the double-buffered block inside the
    generation's VMEM budget.  Never emits a 1-step grid when B >= 16 so the
    'parallel' batch axis can shard across both TensorCores on v7x.
    """
    row_bytes = max(N * itemsize, 1)
    tb = _round_up8(target_block_bytes // row_bytes)
    max_rows = _round_down8(vmem_budget_bytes // (2 * row_bytes))
    tb = min(tb, max_rows)
    if B <= tb:
        if B >= 16:
            tb = min(tb, _round_up8(pl.cdiv(B, 2)))   # >= 2 grid steps
        else:
            tb = B                                    # block == full batch
    return tb


def weighted_ce(yhat, y_raw, weights_pos, weights_neg, *, min_val=1.0,
                target_block_bytes=8 << 20, bf16_logs=False):
    """Pallas implementation of WeightedCE.forward.

    yhat:         (..., *Y_raw.shape)  predictions in (0, 1), any float dtype
    y_raw:        target tensor (any shape), flattened to num_dims internally
    weights_pos:  (num_dims,) learnable positive weights
    weights_neg:  (num_dims,) learnable negative weights
    returns:      yhat.shape[:-y_raw.ndim], float32
    """
    y_nd = max(y_raw.ndim, 1)
    num_dims = int(np.prod(y_raw.shape))
    batch_shape = yhat.shape[:-y_nd]

    # Collapse leading dims only -- no dtype cast, no extra HBM copy of Yhat.
    yhat2 = yhat.reshape(-1, num_dims)
    B, N = yhat2.shape

    # Fuse target + pre-clamped, pre-negated weights into one (3, N) side
    # input: one DMA per grid step instead of three, and the per-element
    # negate disappears from the kernel's VALU path entirely.
    side = jnp.stack(
        [
            y_raw.reshape(-1).astype(jnp.float32),
            -jnp.maximum(weights_pos.reshape(-1).astype(jnp.float32), float(min_val)),
            -jnp.maximum(weights_neg.reshape(-1).astype(jnp.float32), float(min_val)),
        ],
        axis=0,
    )

    itemsize = jnp.dtype(yhat2.dtype).itemsize
    vmem_cap = _vmem_capacity_bytes()
    # Generation-gated budget for the double-buffered Yhat stream:
    # v5e/v6e (128 MiB) -> 48 MiB, v7x (64 MiB/TC) -> 24 MiB.
    vmem_budget = min(48 << 20, max(16 << 20, vmem_cap // 2 - (8 << 20)))
    tb = _choose_tile(B, N, itemsize, target_block_bytes, vmem_budget)
    grid = (pl.cdiv(B, tb),)

    # Explicit, generation-safe scoped-VMEM limit: double-buffered Yhat block
    # + side input + output, with headroom, capped at half the physical VMEM
    # (64 MiB on v5e/v6e, 32 MiB on v7x).
    working = 2 * tb * N * itemsize + 2 * 8 * N * 4 + 2 * tb * 4
    vmem_cap_limit = min(max(vmem_cap // 2, 16 << 20), 64 << 20)
    vmem_limit = int(min(max(2 * working, 16 << 20), vmem_cap_limit))

    cost = pl.CostEstimate(
        flops=15 * B * N,
        transcendentals=2 * B * N,
        bytes_accessed=B * N * itemsize + 3 * N * 4 + B * 4,
    )

    # TODO(synk): if num_dims ever grows so large that even an 8-row block
    # overflows VMEM, add a second ("arbitrary", last) grid axis over N with a
    # (tb, 1) accumulator scratch and pl.when init/finalize.
    out = pl.pallas_call(
        functools.partial(_weighted_ce_kernel, inv_n=1.0 / N, bf16_logs=bf16_logs),
        out_shape=jax.ShapeDtypeStruct((B, 1), jnp.float32),
        grid=grid,
        in_specs=[
            pl.BlockSpec((tb, N), lambda i: (i, 0)),   # Yhat tile (native dtype)
            pl.BlockSpec((3, N), lambda i: (0, 0)),    # fused y / -w+ / -w- rows
        ],
        out_specs=pl.BlockSpec((tb, 1), lambda i: (i, 0)),
        compiler_params=pltpu.CompilerParams(
            dimension_semantics=("parallel",),
            vmem_limit_bytes=vmem_limit,
        ),
        cost_estimate=cost,
    )(yhat2, side)

    return out[:, 0].reshape(batch_shape)


def weighted_ce_reference(yhat, y_raw, weights_pos, weights_neg, *, min_val=1.0):
    """Pure-JAX reference mirroring the PyTorch forward."""
    num_dims = int(np.prod(y_raw.shape))
    y = y_raw.reshape(-1).astype(jnp.float32)
    yhat = yhat.reshape(
        (*yhat.shape[:-max(y_raw.ndim, 1)], num_dims)).astype(jnp.float32)
    pos_w = (yhat > y[None]).astype(jnp.float32) * jnp.maximum(
        weights_pos.astype(jnp.float32), min_val)
    neg_w = (yhat < y[None]).astype(jnp.float32) * jnp.maximum(
        weights_neg.astype(jnp.float32), min_val)
    weights = pos_w + neg_w
    error = -(y * jnp.maximum(jnp.log(yhat), -100.0)
              + (1.0 - y) * jnp.maximum(jnp.log(1.0 - yhat), -100.0))
    return (error * weights).mean(axis=-1)


if __name__ == "__main__":
    key = jax.random.PRNGKey(0)
    k_y, k_yhat, k_wp, k_wn, k_yhat2, k_yhat3 = jax.random.split(key, 6)

    min_val = 1.0
    # Y_raw is 2-D (per-instance target matrix); num_dims = 4*32 = 128 lanes.
    Y_raw = jax.random.uniform(k_y, (4, 32), dtype=jnp.float32)
    num_dims = int(np.prod(Y_raw.shape))

    # Deterministic "parameter" init mirroring min_val + torch.rand_like(Y)
    weights_pos = min_val + jax.random.uniform(k_wp, (num_dims,), dtype=jnp.float32)
    weights_neg = min_val + jax.random.uniform(k_wn, (num_dims,), dtype=jnp.float32)

    # --- check 1: small f32 batch (>=2 grid steps so megacore can shard) ----
    Yhat = jax.random.uniform(k_yhat, (16, 4, 32), dtype=jnp.float32,
                              minval=0.01, maxval=0.99)
    out = jax.block_until_ready(
        weighted_ce(Yhat, Y_raw, weights_pos, weights_neg, min_val=min_val))
    ref = weighted_ce_reference(Yhat, Y_raw, weights_pos, weights_neg, min_val=min_val)
    assert out.shape == (16,), out.shape
    np.testing.assert_allclose(np.asarray(out), np.asarray(ref), rtol=1e-5, atol=1e-5)

    # --- check 2: bf16 input, multi-step tiled grid (native-dtype streaming) --
    Yhat_bf16 = jax.random.uniform(k_yhat2, (64, 4, 32), dtype=jnp.float32,
                                   minval=0.01, maxval=0.99).astype(jnp.bfloat16)
    out2 = jax.block_until_ready(
        weighted_ce(Yhat_bf16, Y_raw, weights_pos, weights_neg, min_val=min_val,
                    target_block_bytes=8 * 1024))   # small target -> several steps
    ref2 = weighted_ce_reference(Yhat_bf16.astype(jnp.float32), Y_raw,
                                 weights_pos, weights_neg, min_val=min_val)
    assert out2.shape == (64,), out2.shape
    np.testing.assert_allclose(np.asarray(out2), np.asarray(ref2),
                               rtol=1e-4, atol=1e-4)

    # --- check 3: batch not a tile multiple (partial last block, no jnp.pad) -
    Yhat_odd = jax.random.uniform(k_yhat3, (20, 4, 32), dtype=jnp.float32,
                                  minval=0.01, maxval=0.99)
    out3 = jax.block_until_ready(
        weighted_ce(Yhat_odd, Y_raw, weights_pos, weights_neg, min_val=min_val,
                    target_block_bytes=4 * 1024))   # tb=8 -> grid=3, tail of 4 rows
    ref3 = weighted_ce_reference(Yhat_odd, Y_raw, weights_pos, weights_neg,
                                 min_val=min_val)
    assert out3.shape == (20,), out3.shape
    np.testing.assert_allclose(np.asarray(out3), np.asarray(ref3),
                               rtol=1e-5, atol=1e-5)

    print("KERNEL_OK")
</pallas_src>

<mosaic_0001>
module attributes {stable_mosaic.version = 11 : i64} {
  func.func @_weighted_ce_kernel(%arg0: i32, %arg1: memref<8x128xf32, #tpu.memory_space<vmem>>, %arg2: memref<3x128xf32, #tpu.memory_space<vmem>>, %arg3: memref<8x1xf32, #tpu.memory_space<vmem>>) attributes {dimension_semantics = [#tpu.dimension_semantics<parallel>], iteration_bounds = array<i64: 2>, scalar_prefetch = 0 : i64, scratch_operands = 0 : i64, tpu.core_type = #tpu.core_type<tc>, window_params = [{transform_indices = @transform_0, window_bounds = array<i64: 8, 128>}, {pipeline_mode = #tpu.pipeline_mode<synchronous>, transform_indices = @transform_1, window_bounds = array<i64: 3, 128>}, {transform_indices = @transform_2, window_bounds = array<i64: 8, 1>}]} {
    %c0 = arith.constant 0 : index
    %c0_0 = arith.constant 0 : index
    %0 = vector.load %arg1[%c0, %c0_0] : memref<8x128xf32, #tpu.memory_space<vmem>>, vector<8x128xf32>
    %c0_1 = arith.constant 0 : index
    %c0_2 = arith.constant 0 : index
    %1 = vector.load %arg2[%c0_1, %c0_2] : memref<3x128xf32, #tpu.memory_space<vmem>>, vector<3x128xf32>
    %2 = vector.extract_strided_slice %1 {offsets = [0, 0], sizes = [1, 128], strides = [1, 1]} : vector<3x128xf32> to vector<1x128xf32>
    %3 = vector.shape_cast %2 : vector<1x128xf32> to vector<1x128xf32>
    %4 = vector.broadcast %3 : vector<1x128xf32> to vector<8x128xf32>
    %5 = vector.extract_strided_slice %1 {offsets = [1, 0], sizes = [1, 128], strides = [1, 1]} : vector<3x128xf32> to vector<1x128xf32>
    %6 = vector.extract_strided_slice %1 {offsets = [2, 0], sizes = [1, 128], strides = [1, 1]} : vector<3x128xf32> to vector<1x128xf32>
    %7 = arith.cmpf ogt, %0, %4 : vector<8x128xf32>
    %8 = arith.cmpf olt, %0, %4 : vector<8x128xf32>
    %cst = arith.constant 0.000000e+00 : f32
    %9 = vector.shape_cast %6 : vector<1x128xf32> to vector<1x128xf32>
    %10 = vector.broadcast %9 : vector<1x128xf32> to vector<8x128xf32>
    %11 = vector.broadcast %cst : f32 to vector<8x128xf32>
    %12 = arith.select %8, %10, %11 : vector<8x128xi1>, vector<8x128xf32>
    %13 = vector.shape_cast %5 : vector<1x128xf32> to vector<1x128xf32>
    %14 = vector.broadcast %13 : vector<1x128xf32> to vector<8x128xf32>
    %15 = arith.select %7, %14, %12 : vector<8x128xi1>, vector<8x128xf32>
    %16 = math.log %0 : vector<8x128xf32>
    %cst_3 = arith.constant 1.000000e+00 : f32
    %17 = vector.broadcast %cst_3 : f32 to vector<8x128xf32>
    %18 = arith.subf %17, %0 : vector<8x128xf32>
    %19 = math.log %18 : vector<8x128xf32>
    %cst_4 = arith.constant -1.000000e+02 : f32
    %20 = vector.broadcast %cst_4 : f32 to vector<8x128xf32>
    %21 = arith.maximumf %16, %20 : vector<8x128xf32>
    %cst_5 = arith.constant -1.000000e+02 : f32
    %22 = vector.broadcast %cst_5 : f32 to vector<8x128xf32>
    %23 = arith.maximumf %19, %22 : vector<8x128xf32>
    %24 = arith.subf %21, %23 : vector<8x128xf32>
    %25 = arith.mulf %4, %24 : vector<8x128xf32>
    %26 = arith.addf %25, %23 : vector<8x128xf32>
    %27 = arith.mulf %26, %15 : vector<8x128xf32>
    %cst_6 = arith.constant dense<0.000000e+00> : vector<8xf32>
    %28 = vector.multi_reduction <add>, %27, %cst_6 [1] : vector<8x128xf32> to vector<8xf32>
    %29 = vector.shape_cast %28 : vector<8xf32> to vector<8x1xf32>
    %cst_7 = arith.constant 7.812500e-03 : f32
    %30 = vector.broadcast %cst_7 : f32 to vector<8x1xf32>
    %31 = arith.mulf %29, %30 : vector<8x1xf32>
    %c0_8 = arith.constant 0 : index
    %c0_9 = arith.constant 0 : index
    %32 = vector.load %arg3[%c0_8, %c0_9] : memref<8x1xf32, #tpu.memory_space<vmem>>, vector<8x1xf32>
    tpu.vector_store %arg3[%c0_8, %c0_9], %31 {strides = array<i32>} : memref<8x1xf32, #tpu.memory_space<vmem>>, vector<8x1xf32>,
    return
  }
  func.func @transform_0(%arg0: i32) -> (i32, i32) {
    %c0_i32 = arith.constant 0 : i32
    %c0_i32_0 = arith.constant 0 : i32
    return %arg0, %c0_i32 : i32, i32
  }
  func.func @transform_1(%arg0: i32) -> (i32, i32) {
    %c0_i32 = arith.constant 0 : i32
    %c0_i32_0 = arith.constant 0 : i32
    %c0_i32_1 = arith.constant 0 : i32
    return %c0_i32, %c0_i32_0 : i32, i32
  }
  func.func @transform_2(%arg0: i32) -> (i32, i32) {
    %c0_i32 = arith.constant 0 : i32
    %c0_i32_0 = arith.constant 0 : i32
    return %arg0, %c0_i32 : i32, i32
  }
}

</mosaic_0001>

<bundles_post_ra>
// kernel: tpu_custom_call.1
= control target key start
LH: loop header
LB: loop body
LE: loop exit
PB: predicated region body
PF: predicated region fallthrough
CT: control target
= control target key end

     0   :  { %7 = vsyncpa [#allocation3], 0  ;;  %s610_s0 = inlined_call_operand.hbm [shape: f32[16,128], index: 0, kind: input, shape index: {}]   ;;  %s611_s1 = inlined_call_operand.hbm [shape: f32[3,128], index: 1, kind: input, shape index: {}]   ;;  %s612_s2 = inlined_call_operand.vmem [shape: f32[16,1], index: 2, kind: output, shape index: {}]  }
   0x1   :  { %9 = vsyncpa [#allocation3 + $0x1], 0 }
   0x2   :  { %10 = vsyncpa [#allocation5], 0  ;;  %s462_s9 = smov 0   ;;  %s464_s10 = smov 0  }
   0x3   :  { %s466_s11 = smov 0   ;;  %s468_s12 = smov 0  }
   0x4 LB: > { %s481_s13 = sadd.s32 4294967295, %s443_s12   ;;  %p36_p0 = scmp.ne.s32.totalorder %s435_s10, %s431_s9  ;;  %s443_s12 = sphi %s468_s12, %s630_s12   ;;  %s439_s11 = sphi %s466_s11, %s629_s11   ;;  %s435_s10 = sphi %s464_s10, %s628_s10   ;;  %s431_s9 = sphi %s462_s9, %s627_s9  }
   0x5   : > { %p613_p1 = scmp.eq.s32.totalorder %s481_s13, 0  ;;  %p282_p2 = scmp.ge.s32.totalorder %s443_s12, 1 }
   0x6   : > { %p94_p3 = scmp.lt.s32.totalorder %s443_s12, 3  ;;  %s445_s16 = smov [#allocation4]  }
   0x7   : > { %p489_p4 = por %p613_p1, %p36_p0  ;;  %s107_s17 = sshll.u32 %s445_s16, 4  ;;  %s108_s17 = int_to_ptr.vmem [resolvable:$true] %s107_s17 }
   0x8   : > { %p493_p5 = pnand %p282_p2, %p94_p3  ;;  %s500_s18 = sadd.s32 1, %s443_s12  }
   0x9   : > { %s616_s14 = scalar_select %p489_p4, 1, 0 }
   0xa   : > { %s617_s15 = scalar_select %p493_p5, 1, 0 }
   0xb   : > { %p299_p6 = pneg %p493_p5  ;;  %s20_s20 = ssub.s32 %s443_s12, %s500_s18 }
   0xc   : > { %p510_p8 = scmp.eq.s32.totalorder %s20_s20, 0  ;;  %s23_s22 = sadd.s32 1, %s439_s11 }
   0xd   : > { %p504_p7 = pnand %p299_p6, %p613_p1  ;;  %s347_s25 = scalar_lea.hbm %s611_s1, 64 }
   0xe   : > { %s619_s21 = scalar_select %p510_p8, 1, 0 }
   0xf   : > { %p348_p10 = scmp.ne.s32.totalorder %s611_s1, %s347_s25  ;;  %p349_p11 = pneg %p504_p7 }
  0x10   : > { %p354_p0 = scmp.lt.u32.totalorder %s347_s25, %s611_s1 }
  0x11   : > { %p350_p12 = pnand %p349_p11, %p348_p10 }
  0x13   : > { %p351_p13 = pneg %p350_p12 }
  0x15   : > { %p356_p2 = pnand %p354_p0, %p351_p13 }
  0x17   : > { %359 = shalt.err (!%p356_p2)
}
  0x18   : > { %s360_s30 = scalar_lea.vmem %s108_s17, 64  ;;  %p368_p9 = scmp.lt.s32.totalorder %s108_s17, %s108_s17 }
  0x19   : > { %p361_p3 = scmp.ne.s32.totalorder %s108_s17, %s360_s30  ;;  %p369_p4 = scmp.lt.s32.totalorder %s360_s30, %s360_s30 }
  0x1b   : > { %p363_p6 = pnand %p361_p3, %p349_p11  ;;  %p370_p5 = por %p369_p4, %p368_p9 }
  0x1d   : > { %p364_p1 = pneg %p363_p6 }
  0x1f   : > { %p371_p8 = pnand %p370_p5, %p364_p1 }
  0x21   : > { %374 = shalt.err (!%p371_p8)
}
  0x22   : > { %302 = dma.hbm_to_vmem [thread:$0]  (!%p504_p7), %s611_s1, 64, %s108_s17, [#allocation5]  }
  0x23   : > { %p620_p10 = scmp.ne.s32.totalorder %s619_s21, 0  ;;  %p31_p4 = scmp.eq.s32.totalorder %s443_s12, 0 }
  0x24   : > { %p308_p1 = scmp.lt.s32.totalorder %s443_s12, 2  ;;  %s118_s6 = sand.u32 1, %s439_s11  }
  0x25   : > { %s536_s5 = scalar_select %p620_p10, %s439_s11, %s23_s22  }
  0x26   : > { %s286_s7 = sshll.u32 %s443_s12, 7  ;;  %p621_p5 = scmp.ne.s32.totalorder %s439_s11, %s435_s10 }
  0x27   : > { %s285_s8 = sshll.u32 %s118_s6, 3  ;;  %s548_s19 = scalar_lea.hbm %s610_s0, %s286_s7 }
  0x28   : > { %p32_p8 = por %p31_p4, %p621_p5  ;;  %s122_s20 = scalar_lea.vmem [#allocation2], %s285_s8 }
  0x29   : > { %s129_s12 = sshll.u32 %s122_s20, 4  ;;  %s119_s21 = scalar_lea.sflag [#allocation3], %s118_s6  ;;  %s554_s12 = int_to_ptr.vmem [resolvable:$true] %s129_s12 }
  0x2a   : > { %p550_p7 = pnand %p308_p1, %p32_p8  ;;  %s375_s22 = scalar_lea.hbm %s548_s19, 128 }
  0x2b   : > { %p376_p9 = scmp.ne.s32.totalorder %s548_s19, %s375_s22  ;;  %s380_s25 = scalar_lea.hbm %s610_s0, 256 }
  0x2c   : > { %p377_p11 = pneg %p550_p7  ;;  %p381_p0 = scmp.lt.u32.totalorder %s548_s19, %s610_s0 }
  0x2d   : > { %p382_p2 = scmp.lt.u32.totalorder %s380_s25, %s375_s22  ;;  %p384_p6 = scmp.lt.u32.totalorder %s375_s22, %s548_s19 }
  0x2e   : > { %p378_p12 = pnand %p377_p11, %p376_p9 }
  0x2f   : > { %p383_p3 = por %p382_p2, %p381_p0 }
  0x30   : > { %p379_p13 = pneg %p378_p12 }
  0x31   : > { %p385_p10 = por %p384_p6, %p383_p3 }
  0x33   : > { %p386_p4 = pnand %p385_p10, %p379_p13 }
  0x35   : > { %389 = shalt.err (!%p386_p4)
}
  0x36   : > { %s390_s28 = scalar_lea.vmem %s554_s12, 128  ;;  %s446_s29 = smov [#allocation2]  }
  0x37   : > { %p391_p1 = scmp.ne.s32.totalorder %s554_s12, %s390_s28  ;;  %s395_s30 = sshll.u32 %s446_s29, 4  ;;  %s396_s30 = int_to_ptr.vmem [resolvable:$false] %s395_s30 }
  0x38   : > { %s397_s3 = scalar_lea.vmem %s396_s30, 256  ;;  %p398_p9 = scmp.lt.s32.totalorder %s554_s12, %s396_s30 }
  0x39   : > { %p393_p5 = pnand %p391_p1, %p377_p11  ;;  %p399_p12 = scmp.lt.s32.totalorder %s397_s3, %s390_s28 }
  0x3b   : > { %p394_p8 = pneg %p393_p5  ;;  %p400_p0 = por %p399_p12, %p398_p9 }
  0x3d   : > { %p401_p2 = pnand %p400_p0, %p394_p8 }
  0x3f   : > { %404 = shalt.err (!%p401_p2)
}
  0x40   : > { %306 = dma.hbm_to_vmem [thread:$0]  (!%p550_p7), %s548_s19, 128, %s554_s12, %s119_s21  }
  0x41   : > { %p623_p13 = scmp.ne.s32.totalorder %s617_s15, 0 }
  0x42   : > { %s140_s4 = sand.u32 (!%p623_p13), 1, %s435_s10   ;;  %p624_p11 = scmp.ne.s32.totalorder (!%p623_p13), %s616_s14, 0 }
  0x43   : > { %138 = sbr.rel (%p623_p13) target bundleno = 249 (0xf9), region = 28  ;;  %s288_s6 = sshll.u32 (!%p623_p13), %s140_s4, 3 }
  0x44   : > { %s141_s7 = scalar_lea.sflag (!%p623_p13), [#allocation3], %s140_s4  ;;  %s144_s8 = scalar_lea.vmem (!%p623_p13), [#allocation2], %s288_s6 }
  0x4a   : > { %422 = dma.done.wait (%p624_p11), %s141_s7, 128  }
  0x4b   : > { %424 = vsyncadd (%p624_p11), %s141_s7, 4294967168  ;;  %p625_p3 = scmp.eq.s32.totalorder %s481_s13, 0 }
  0x4d   : > { %426 = dma.done.wait (%p625_p3), [#allocation5], 64   ;;  %p626_p6 = pmov %p625_p3 }
  0x4e   : > { %v172_v0 = vld [vmem:[%s144_s8] sm:$0xff]  ;;  %v174_v1 = vlaneseq  ;;  %v173_v5 = vld [vmem:[#allocation4] sm:$0x7]  ;;  %p168_p7 = scmp.lt.s32.totalorder %s481_s13, 1  ;;  %vm204_vm2 = vcmask 7168  }
  0x4f   : > { %428 = vsyncadd (%p626_p6), [#allocation5], 4294967232  ;;  %343 = vlog2.f32 %v172_v0  ;;  %v192_v2 = vsub.f32 1.0, %v172_v0 }
  0x50   : > { %v175_v3 = vshrl.u32 %v174_v1, 7  ;;  %s632_s13 = smov (!%p168_p7, %s481_s13), 1 }
  0x51   : > { %345 = vlog2.f32 %v192_v2  ;;  %s290_s14 = sshll.u32 %s632_s13, 3 }
  0x52   : > { %v176_v4 = vsub.s32 0, %v175_v3  ;;  %v182_v7 = vsub.s32 2, %v175_v3  ;;  %v187_v11 = vsub.s32 1, %v175_v3  ;;  %s171_s16 = scalar_lea.vmem %s612_s2, %s290_s14 }
  0x54   : > { %v177_v8 = vrot.slane %v173_v5, %v176_v4  ;;  %v183_v12 = vrot.slane %v173_v5, %v182_v7  ;;  %v188_v16 = vrot.slane %v173_v5, %v187_v11 }
  0x56   : > { %vm179_vm0 = vcmp.lt.f32.partialorder %v172_v0, %v177_v8  ;;  %vm178_vm1 = vcmp.gt.f32.partialorder %v172_v0, %v177_v8 }
  0x57   : > { %v184_v17 = vsel %vm179_vm0, %v183_v12, 0.0 }
  0x58   : > { %v189_v20 = vsel %vm178_vm1, %v188_v16, %v184_v17 }
  0x59   : > { %v344_v6 = vpop.eup %343 }
  0x5a   : > { %v191_v9 = vmul.f32 0.6931472, %v344_v6 }
  0x5b   : > { %v346_v10 = vpop.eup %345 }
  0x5c   : > { %v194_v13 = vmul.f32 0.6931472, %v346_v10  ;;  %v195_v14 = vmax.f32 %v191_v9, -100.0 }
  0x5e   : > { %v196_v15 = vmax.f32 %v194_v13, -100.0 }
  0x60   : > { %v197_v18 = vsub.f32 %v195_v14, %v196_v15 }
  0x62   : > { %v198_v19 = vmul.f32 %v197_v18, %v177_v8 }
  0x64   : > { %v199_v21 = vadd.f32 %v198_v19, %v196_v15 }
  0x66   : > { %v200_v22 = vmul.f32 %v199_v21, %v189_v20 }
  0x68   : > { %201 = vadd.xlane.f32.xlu0 %v200_v22 }
  0xf5   : > { %v202_v23 = vpop.xlane.xlu0 %201 }
  0xf6   : > { %v203_v24 = vmul.f32 0.0078125, %v202_v23 }
  0xf8   : > { %205 = vst.msk [vmem:[%s171_s16] sm:$0xff] %vm204_vm2, %v203_v24 }
  0xf9 PF: > { %p13_p10 = scmp.ge.s32.totalorder %s500_s18, 4   ;;  %s627_s9 = smov %s435_s10 }
  0xfa   : > { %s628_s10 = smov %s439_s11  ;;  %s629_s11 = smov %s536_s5 }
  0xfb   : > { %s630_s12 = smov %s500_s18  ;;  %15 = sbr.rel (!%p13_p10) target bundleno = 4 (0x4), region = 72 }
 0x102   :  { %225 = vsyncpa [#allocation3], 1 }
 0x103   :  { %227 = vsyncpa [#allocation3 + $0x1], 1 }
 0x104   :  { %228 = vsyncpa [#allocation5], 1 }

</bundles_post_ra>
